<compile_context>
chip_gen: v6e
topology: v6e:2x2x1
jax: 0.10.0
libtpu: 0.0.40
codegen_flags: <defaults>
</compile_context>

<pallas_src>
import functools

import jax
import jax.numpy as jnp
from jax.experimental import pallas as pl
from jax.experimental.pallas import tpu as pltpu


def _sas_layernorm_kernel(x_ref, w_ref, b_ref, o_ref, *, eps, inv_c, cast_to_bf16):
    # Emulate `input.to(bf16)` (skipped if already bf16), then f32 statistics.
    x = x_ref[...]
    if cast_to_bf16:
        x = x.astype(jnp.bfloat16)
    xf = x.astype(jnp.float32)

    # Centered two-pass statistics (matches F.layer_norm's fp32 accumulation
    # and avoids catastrophic cancellation of E[x^2] - E[x]^2).
    mean = jnp.sum(xf, axis=-1, keepdims=True) * inv_c
    xc = xf - mean
    var = jnp.sum(xc * xc, axis=-1, keepdims=True) * inv_c
    inv = jax.lax.rsqrt(var + eps)  # EUP; effectively free next to the VPU work

    # Affine params: upcast once per grid step.
    w = w_ref[...].astype(jnp.float32)  # (1, C)
    b = b_ref[...].astype(jnp.float32)  # (1, C)

    y = xc * inv * w + b
    # F.layer_norm with bf16 inputs/params returns bf16; the module then casts
    # back to orig_dtype -> emulate the bf16 round-trip before the final cast.
    # (Ragged last grid block: padded rows compute garbage here, but Pallas
    # masks their writeback, so it is benign.)
    o_ref[...] = y.astype(jnp.bfloat16).astype(o_ref.dtype)


def _round_up(n, m):
    return ((n + m - 1) // m) * m


def _sublane_align(dtype):
    # Sublane tile for packed dtypes: 8 rows for 32-bit, 16 for 16-bit, 32 for 8-bit.
    return {1: 32, 2: 16, 4: 8}.get(jnp.dtype(dtype).itemsize, 8)


def _tpu_generation_info():
    """(vmem_capacity_bytes, is_multicore_chip) with safe fallbacks."""
    vmem_bytes = None
    try:
        vmem_bytes = int(pltpu.get_tpu_info().vmem_capacity_bytes)
    except Exception:
        vmem_bytes = None
    kind = ""
    try:
        kind = jax.devices()[0].device_kind.lower()
    except Exception:
        kind = ""
    if vmem_bytes is None:
        # Conservative default: assume the smallest per-core VMEM (v7x, 64 MiB).
        vmem_bytes = 64 * 1024 * 1024
    # Chips whose TensorCores are fed by a single "parallel" grid axis.
    multicore = any(tag in kind for tag in ("v7", "v4", "v5p"))
    return vmem_bytes, multicore


def sas_layer_norm(x, weight, bias=None, *, eps=1e-5):
    """LayerNorm over the last dim of `x` using a Pallas TPU kernel.

    x: any shape (..., C), any float dtype (output has the same dtype).
    weight, bias: shape (C,), bf16 (bias may be None -> treated as zeros).
    """
    orig_shape = x.shape
    orig_dtype = x.dtype
    C = orig_shape[-1]
    rows = 1
    for d in orig_shape[:-1]:
        rows *= d

    x2d = x.reshape(rows, C)
    w2d = weight.reshape(1, C)
    if bias is None:
        b2d = jnp.zeros((1, C), dtype=weight.dtype)
    else:
        b2d = bias.reshape(1, C)

    # --- Generation-aware VMEM budget -----------------------------------------
    vmem_capacity, multicore = _tpu_generation_info()
    if vmem_capacity >= 128 * 1024 * 1024:      # v5e / v6e: 128 MiB physical VMEM
        tile_budget = 48 * 1024 * 1024
        vmem_limit = 96 * 1024 * 1024
    else:                                        # v7x (64 MiB / TC) or unknown
        tile_budget = 16 * 1024 * 1024
        vmem_limit = 40 * 1024 * 1024

    # --- Row-tile sizing -------------------------------------------------------
    # Account for everything that is live per tile:
    #   2 pipeline buffers each for the input and output tiles, plus ~4 live
    #   full-tile f32 intermediates inside the body (xf, xc, xc*xc, y).
    x_b = jnp.dtype(x2d.dtype).itemsize
    o_b = jnp.dtype(orig_dtype).itemsize
    bytes_per_row = C * (2 * x_b + 2 * o_b + 4 * 4)

    row_align = max(_sublane_align(x2d.dtype), _sublane_align(orig_dtype))
    tr = tile_budget // max(bytes_per_row, 1)
    tr = max(row_align, (tr // row_align) * row_align)
    # Beyond ~1-2K rows per step there is no measurable roofline gain; cap to
    # keep compile time and VMEM pressure bounded.
    tr = min(tr, 2048)
    tr = min(tr, _round_up(rows, row_align))

    # On megacore chips make sure the "parallel" row axis has enough steps to
    # feed both TensorCores and keep the DMA pipeline busy (>=4 when possible).
    # On single-core chips (v5e/v6e) the grid is a serial loop, so never split
    # what already fits one tile.
    if multicore:
        steps = pl.cdiv(rows, tr)
        if steps < 4 and rows > 2 * row_align:
            tr = max(row_align, _round_up(pl.cdiv(rows, 4), row_align))

    grid = (pl.cdiv(rows, tr),)  # ragged last block is masked by Pallas

    kernel = functools.partial(
        _sas_layernorm_kernel,
        eps=eps,
        inv_c=1.0 / C,
        cast_to_bf16=(x2d.dtype != jnp.bfloat16),
    )

    out2d = pl.pallas_call(
        kernel,
        out_shape=jax.ShapeDtypeStruct((rows, C), orig_dtype),
        grid_spec=pltpu.PrefetchScalarGridSpec(
            num_scalar_prefetch=0,
            grid=grid,
            in_specs=[
                pl.BlockSpec((tr, C), lambda i: (i, 0)),   # x rows tile
                pl.BlockSpec((1, C), lambda i: (0, 0)),    # weight (broadcast)
                pl.BlockSpec((1, C), lambda i: (0, 0)),    # bias (broadcast)
            ],
            out_specs=pl.BlockSpec((tr, C), lambda i: (i, 0)),
        ),
        compiler_params=pltpu.CompilerParams(
            dimension_semantics=("parallel",),
            vmem_limit_bytes=vmem_limit,
        ),
    )(x2d, w2d, b2d)

    return out2d.reshape(orig_shape)


def reference_layer_norm(x, weight, bias, eps=1e-5):
    """Pure-JAX reference mirroring the PyTorch module's forward."""
    orig_dtype = x.dtype
    xb = x.astype(jnp.bfloat16).astype(jnp.float32)
    mean = jnp.mean(xb, axis=-1, keepdims=True)
    var = jnp.mean((xb - mean) ** 2, axis=-1, keepdims=True)
    y = (xb - mean) * jax.lax.rsqrt(var + eps)
    y = y * weight.astype(jnp.float32) + (
        bias.astype(jnp.float32) if bias is not None else 0.0
    )
    return y.astype(jnp.bfloat16).astype(orig_dtype)


if __name__ == "__main__":
    key = jax.random.PRNGKey(0)

    # Transformer-style shape: (batch, seq, hidden), lane-dense hidden (mult of 128).
    batch, seq, hidden = 2, 8, 256
    x = jax.random.normal(key, (batch, seq, hidden), dtype=jnp.float32)

    # Deterministic parameter init matching SASLayerNorm.__init__ (bias=True):
    # weight = ones(ndim) in bf16, bias = zeros(ndim) in bf16.
    weight = jnp.ones((hidden,), dtype=jnp.bfloat16)
    bias = jnp.zeros((hidden,), dtype=jnp.bfloat16)

    out = jax.block_until_ready(sas_layer_norm(x, weight, bias))
    ref = reference_layer_norm(x, weight, bias)
    assert out.shape == x.shape and out.dtype == x.dtype
    assert jnp.allclose(out, ref, atol=2e-2, rtol=2e-2), "mismatch vs reference"

    # Ragged-grid + small-C (non-lane-dense) path with bias=None.
    hidden2 = 32
    weight2 = jnp.ones((hidden2,), dtype=jnp.bfloat16)
    x2 = jax.random.normal(jax.random.PRNGKey(1), (3, 7, hidden2), dtype=jnp.float32)
    out2 = jax.block_until_ready(sas_layer_norm(x2, weight2, None))
    ref2 = reference_layer_norm(x2, weight2, None)
    assert jnp.allclose(out2, ref2, atol=2e-2, rtol=2e-2), "ragged mismatch"

    # bf16-input path (the leading cast is skipped in-kernel).
    x3 = jax.random.normal(jax.random.PRNGKey(2), (batch, seq, hidden),
                           dtype=jnp.float32).astype(jnp.bfloat16)
    out3 = jax.block_until_ready(sas_layer_norm(x3, weight, bias))
    ref3 = reference_layer_norm(x3, weight, bias)
    assert out3.dtype == jnp.bfloat16
    assert jnp.allclose(out3.astype(jnp.float32), ref3.astype(jnp.float32),
                        atol=2e-2, rtol=2e-2), "bf16-input mismatch"

    print("KERNEL_OK")
</pallas_src>

<mosaic_0001>
module attributes {stable_mosaic.version = 11 : i64} {
  func.func @_sas_layernorm_kernel(%arg0: i32, %arg1: memref<16x256xf32, #tpu.memory_space<vmem>>, %arg2: memref<1x256xbf16, #tpu.memory_space<vmem>>, %arg3: memref<1x256xbf16, #tpu.memory_space<vmem>>, %arg4: memref<16x256xf32, #tpu.memory_space<vmem>>) attributes {dimension_semantics = [#tpu.dimension_semantics<parallel>], iteration_bounds = array<i64: 1>, scalar_prefetch = 0 : i64, scratch_operands = 0 : i64, tpu.core_type = #tpu.core_type<tc>, window_params = [{transform_indices = @transform_0, window_bounds = array<i64: 16, 256>}, {pipeline_mode = #tpu.pipeline_mode<synchronous>, transform_indices = @transform_1, window_bounds = array<i64: 1, 256>}, {pipeline_mode = #tpu.pipeline_mode<synchronous>, transform_indices = @transform_2, window_bounds = array<i64: 1, 256>}, {transform_indices = @transform_3, window_bounds = array<i64: 16, 256>}]} {
    %c0 = arith.constant 0 : index
    %c0_0 = arith.constant 0 : index
    %0 = vector.load %arg1[%c0, %c0_0] : memref<16x256xf32, #tpu.memory_space<vmem>>, vector<16x256xf32>
    %1 = arith.truncf %0 : vector<16x256xf32> to vector<16x256xbf16>
    %2 = arith.extf %1 : vector<16x256xbf16> to vector<16x256xf32>
    %cst = arith.constant dense<0.000000e+00> : vector<16xf32>
    %3 = vector.multi_reduction <add>, %2, %cst [1] : vector<16x256xf32> to vector<16xf32>
    %4 = vector.shape_cast %3 : vector<16xf32> to vector<16x1xf32>
    %cst_1 = arith.constant 3.906250e-03 : f32
    %5 = vector.broadcast %cst_1 : f32 to vector<16x1xf32>
    %6 = arith.mulf %4, %5 : vector<16x1xf32>
    %7 = vector.broadcast %6 : vector<16x1xf32> to vector<16x256xf32>
    %8 = arith.subf %2, %7 : vector<16x256xf32>
    %9 = arith.mulf %8, %8 : vector<16x256xf32>
    %cst_2 = arith.constant dense<0.000000e+00> : vector<16xf32>
    %10 = vector.multi_reduction <add>, %9, %cst_2 [1] : vector<16x256xf32> to vector<16xf32>
    %11 = vector.shape_cast %10 : vector<16xf32> to vector<16x1xf32>
    %cst_3 = arith.constant 3.906250e-03 : f32
    %12 = vector.broadcast %cst_3 : f32 to vector<16x1xf32>
    %13 = arith.mulf %11, %12 : vector<16x1xf32>
    %cst_4 = arith.constant 9.99999974E-6 : f32
    %14 = vector.broadcast %cst_4 : f32 to vector<16x1xf32>
    %15 = arith.addf %13, %14 : vector<16x1xf32>
    %16 = math.rsqrt %15 : vector<16x1xf32>
    %c0_5 = arith.constant 0 : index
    %c0_6 = arith.constant 0 : index
    %17 = vector.load %arg2[%c0_5, %c0_6] : memref<1x256xbf16, #tpu.memory_space<vmem>>, vector<1x256xbf16>
    %18 = arith.extf %17 : vector<1x256xbf16> to vector<1x256xf32>
    %c0_7 = arith.constant 0 : index
    %c0_8 = arith.constant 0 : index
    %19 = vector.load %arg3[%c0_7, %c0_8] : memref<1x256xbf16, #tpu.memory_space<vmem>>, vector<1x256xbf16>
    %20 = arith.extf %19 : vector<1x256xbf16> to vector<1x256xf32>
    %21 = vector.broadcast %16 : vector<16x1xf32> to vector<16x256xf32>
    %22 = arith.mulf %8, %21 : vector<16x256xf32>
    %23 = vector.broadcast %18 : vector<1x256xf32> to vector<16x256xf32>
    %24 = arith.mulf %22, %23 : vector<16x256xf32>
    %25 = vector.broadcast %20 : vector<1x256xf32> to vector<16x256xf32>
    %26 = arith.addf %24, %25 : vector<16x256xf32>
    %27 = arith.truncf %26 : vector<16x256xf32> to vector<16x256xbf16>
    %28 = arith.extf %27 : vector<16x256xbf16> to vector<16x256xf32>
    %c0_9 = arith.constant 0 : index
    %c0_10 = arith.constant 0 : index
    %29 = vector.load %arg4[%c0_9, %c0_10] : memref<16x256xf32, #tpu.memory_space<vmem>>, vector<16x256xf32>
    tpu.vector_store %arg4[%c0_9, %c0_10], %28 {strides = array<i32>} : memref<16x256xf32, #tpu.memory_space<vmem>>, vector<16x256xf32>,
    return
  }
  func.func @transform_0(%arg0: i32) -> (i32, i32) {
    %c0_i32 = arith.constant 0 : i32
    %c0_i32_0 = arith.constant 0 : i32
    return %arg0, %c0_i32 : i32, i32
  }
  func.func @transform_1(%arg0: i32) -> (i32, i32) {
    %c0_i32 = arith.constant 0 : i32
    %c0_i32_0 = arith.constant 0 : i32
    %c0_i32_1 = arith.constant 0 : i32
    return %c0_i32, %c0_i32_0 : i32, i32
  }
  func.func @transform_2(%arg0: i32) -> (i32, i32) {
    %c0_i32 = arith.constant 0 : i32
    %c0_i32_0 = arith.constant 0 : i32
    %c0_i32_1 = arith.constant 0 : i32
    return %c0_i32, %c0_i32_0 : i32, i32
  }
  func.func @transform_3(%arg0: i32) -> (i32, i32) {
    %c0_i32 = arith.constant 0 : i32
    %c0_i32_0 = arith.constant 0 : i32
    return %arg0, %c0_i32 : i32, i32
  }
}

</mosaic_0001>

<bundles_post_ra>
// kernel: tpu_custom_call.1
= control target key start
LH: loop header
LB: loop body
LE: loop exit
PB: predicated region body
PF: predicated region fallthrough
CT: control target
= control target key end

     0   :  { %8 = vsyncpa [#allocation3], 0  ;;  %s279_s0 = inlined_call_operand.hbm [shape: f32[16,256], index: 0, kind: input, shape index: {}]   ;;  %s280_s1 = inlined_call_operand.hbm [shape: bf16[1,256], index: 1, kind: input, shape index: {}]   ;;  %s281_s2 = inlined_call_operand.vmem [shape: bf16[1,256], index: 2, kind: input, shape index: {}]   ;;  %s282_s3 = inlined_call_operand.hbm [shape: f32[16,256], index: 3, kind: output, shape index: {}]  }
   0x1   :  { %9 = vsyncpa [#allocation6], 0 }
   0x2   :  { %10 = vsyncpa [#allocation4], 0  ;;  %s236_s12 = smov [#allocation2]  }
   0x3   :  { %s16_s13 = sshll.u32 %s236_s12, 4  ;;  %s17_s13 = int_to_ptr.vmem [resolvable:$true] %s16_s13 }
   0x4   :  { %s178_s14 = scalar_lea.vmem %s17_s13, 512  ;;  %p183_p1 = scmp.lt.s32.totalorder %s17_s13, %s17_s13 }
   0x5   :  { %p179_p0 = scmp.ne.s32.totalorder %s17_s13, %s178_s14  ;;  %p184_p2 = scmp.lt.s32.totalorder %s178_s14, %s178_s14 }
   0x7   :  { %p185_p3 = por %p184_p2, %p183_p1 }
   0x9   :  { %p186_p4 = pnand %p185_p3, %p179_p0 }
   0xb   :  { %189 = shalt.err (!%p186_p4)
}
   0xc   :  { %s237_s15 = smov 256   ;;  %s238_s16 = smov 16  }
   0xd   :  { %22 = dma.hbm_to_vmem [thread:$0]  %s279_s0, 512, %s17_s13, [#allocation3], %s237_s15, %s237_s15, %s238_s16  }
   0xe   :  { %s239_s19 = smov [#allocation5]  }
   0xf   :  { %s29_s20 = sshll.u32 %s239_s19, 4  ;;  %s30_s20 = int_to_ptr.vmem [resolvable:$true] %s29_s20 }
  0x10   :  { %s198_s21 = scalar_lea.vmem %s30_s20, 32  ;;  %p203_p6 = scmp.lt.s32.totalorder %s30_s20, %s30_s20 }
  0x11   :  { %p199_p5 = scmp.ne.s32.totalorder %s30_s20, %s198_s21  ;;  %p204_p7 = scmp.lt.s32.totalorder %s198_s21, %s198_s21 }
  0x13   :  { %p205_p8 = por %p204_p7, %p203_p6 }
  0x15   :  { %p206_p9 = pnand %p205_p8, %p199_p5 }
  0x17   :  { %209 = shalt.err (!%p206_p9)
}
  0x18   :  { %32 = dma.hbm_to_vmem [thread:$0]  %s280_s1, 32, %s30_s20, [#allocation6]  }
  0x19   :  { %230 = dma.done.wait [#allocation3], 512  }
  0x1a   :  { %231 = vsyncadd [#allocation3], 4294966784 }
  0x1b   :  { %232 = dma.done.wait [#allocation6], 32  }
  0x1c   :  { %233 = vsyncadd [#allocation6], 4294967264  ;;  %v41_v0 = vld [vmem:[#allocation2] sm:$0xff]  ;;  %v42_v1 = vld [vmem:[#allocation2 + $0x8] sm:$0xff]  ;;  %v88_v29 = vlaneseq }
  0x1d   :  { %v43_v2 = vld [vmem:[#allocation2 + $0x10] sm:$0xff]  ;;  %v44_v3 = vld [vmem:[#allocation2 + $0x18] sm:$0xff]  ;;  %v79_v34 = vld [vmem:[#allocation5] sm:$0x3] }
  0x1e   :  { %v45_v4 = vpack.c.bf16 %v43_v2, %v41_v0  ;;  %v46_v5 = vpack.c.bf16 %v44_v3, %v42_v1  ;;  %v89_v33 = vshrl.u32 %v88_v29, 7  ;;  %v80_v35 = vunpack.c.l.bf16 %v79_v34  ;;  %v81_v36 = vld [vmem:[%s281_s2] sm:$0x3]  ;;  %s240_s2 = smov [#allocation7]  }
  0x1f   :  { %v82_v39 = vunpack.c.l.bf16 %v81_v36  ;;  %s148_s24 = sshll.u32 %s240_s2, 4  ;;  %s149_s24 = int_to_ptr.vmem [resolvable:$true] %s148_s24 }
  0x20   :  { %v47_v6 = vunpack.c.l.bf16 %v45_v4  ;;  %v48_v7 = vunpack.c.l.bf16 %v46_v5  ;;  %v49_v8 = vunpack.c.h.bf16 %v45_v4  ;;  %v50_v9 = vunpack.c.h.bf16 %v46_v5  ;;  %s210_s25 = scalar_lea.vmem %s149_s24, 512  ;;  %p215_p11 = scmp.lt.s32.totalorder %s149_s24, %s149_s24 }
  0x21   :  { %v90_v37 = vsub.s32 0, %v89_v33  ;;  %v94_v38 = vsub.s32 2, %v89_v33  ;;  %p211_p10 = scmp.ne.s32.totalorder %s149_s24, %s210_s25  ;;  %p216_p12 = scmp.lt.s32.totalorder %s210_s25, %s210_s25 }
  0x22   :  { %v51_v10 = vadd.f32 %v48_v7, %v47_v6  ;;  %v54_v11 = vadd.f32 %v50_v9, %v49_v8 }
  0x23   :  { %v91_v40 = vrot.slane %v80_v35, %v90_v37  ;;  %v95_v41 = vrot.slane %v80_v35, %v94_v38  ;;  %v114_v43 = vrot.slane %v82_v39, %v90_v37  ;;  %v118_v44 = vrot.slane %v82_v39, %v94_v38  ;;  %p217_p13 = por %p216_p12, %p215_p11 }
  0x24   :  { %52 = vadd.xlane.f32.xlu0 %v51_v10 }
  0x25   :  { %v101_v47 = vrot.slane %v91_v40, %v90_v37  ;;  %v105_v48 = vrot.slane %v95_v41, %v90_v37  ;;  %v124_v50 = vrot.slane %v114_v43, %v90_v37  ;;  %v128_v51 = vrot.slane %v118_v44, %v90_v37  ;;  %p218_p0 = pnand %p217_p13, %p211_p10 }
  0x28   :  { %55 = vadd.xlane.f32.xlu0 %v54_v11 }
  0xad   :  { %v53_v12 = vpop.xlane.xlu0 %52 }
  0xae   :  { %v57_v13 = vmul.f32 0.00390625, %v53_v12 }
  0xb0   :  { %v59_v14 = vsub.f32 %v47_v6, %v57_v13  ;;  %v60_v15 = vsub.f32 %v48_v7, %v57_v13 }
  0xb1   :  { %v56_v16 = vpop.xlane.xlu0 %55 }
  0xb2   :  { %v58_v17 = vmul.f32 0.00390625, %v56_v16  ;;  %v63_v18 = vmul.f32 %v59_v14, %v59_v14  ;;  %v64_v19 = vmul.f32 %v60_v15, %v60_v15 }
  0xb4   :  { %v61_v20 = vsub.f32 %v49_v8, %v58_v17  ;;  %v62_v21 = vsub.f32 %v50_v9, %v58_v17  ;;  %v67_v22 = vadd.f32 %v64_v19, %v63_v18 }
  0xb6   :  { %68 = vadd.xlane.f32.xlu1 %v67_v22  ;;  %v65_v23 = vmul.f32 %v61_v20, %v61_v20  ;;  %v66_v24 = vmul.f32 %v62_v21, %v62_v21 }
  0xb8   :  { %v70_v25 = vadd.f32 %v66_v24, %v65_v23 }
  0xba   :  { %71 = vadd.xlane.f32.xlu1 %v70_v25 }
 0x13f   :  { %v69_v26 = vpop.xlane.xlu1 %68 }
 0x140   :  { %v73_v27 = vmul.f32 0.00390625, %v69_v26 }
 0x142   :  { %v75_v28 = vadd.f32 1e-05, %v73_v27 }
 0x143   :  { %v72_v30 = vpop.xlane.xlu1 %71 }
 0x144   :  { %166 = vrsqrt.f32 %v75_v28  ;;  %v74_v31 = vmul.f32 0.00390625, %v72_v30 }
 0x146   :  { %v76_v32 = vadd.f32 1e-05, %v74_v31 }
 0x148   :  { %168 = vrsqrt.f32 %v76_v32 }
 0x151   :  { %v167_v42 = vpop.eup %166 }
 0x152   :  { %v83_v45 = vmul.f32 %v167_v42, %v59_v14  ;;  %v84_v46 = vmul.f32 %v167_v42, %v60_v15 }
 0x154   :  { %v106_v54 = vmul.f32 %v101_v47, %v83_v45  ;;  %v107_v55 = vmul.f32 %v105_v48, %v84_v46 }
 0x155   :  { %v169_v49 = vpop.eup %168 }
 0x156   :  { %v85_v52 = vmul.f32 %v169_v49, %v61_v20  ;;  %v86_v53 = vmul.f32 %v169_v49, %v62_v21  ;;  %v129_v58 = vadd.f32 %v124_v50, %v106_v54  ;;  %v130_v59 = vadd.f32 %v128_v51, %v107_v55 }
 0x158   :  { %v108_v56 = vmul.f32 %v101_v47, %v85_v52  ;;  %v109_v57 = vmul.f32 %v105_v48, %v86_v53 }
 0x15a   :  { %v131_v60 = vadd.f32 %v124_v50, %v108_v56  ;;  %v132_v61 = vadd.f32 %v128_v51, %v109_v57 }
 0x15c   :  { %v133_v62 = vpack.c.bf16 %v131_v60, %v129_v58  ;;  %v134_v63 = vpack.c.bf16 %v132_v61, %v130_v59 }
 0x15e   :  { %v135_v0 = vunpack.c.l.bf16 %v133_v62  ;;  %v136_v1 = vunpack.c.l.bf16 %v134_v63  ;;  %v137_v2 = vunpack.c.h.bf16 %v133_v62  ;;  %v138_v3 = vunpack.c.h.bf16 %v134_v63 }
 0x160   :  { %139 = vst [vmem:[#allocation7] sm:$0xff] %v135_v0  ;;  %140 = vst [vmem:[#allocation7 + $0x8] sm:$0xff] %v136_v1 }
 0x161   :  { %141 = vst [vmem:[#allocation7 + $0x10] sm:$0xff] %v137_v2  ;;  %142 = vst [vmem:[#allocation7 + $0x18] sm:$0xff] %v138_v3 }
 0x162   :  { %221 = shalt.err (!%p218_p0)
}
 0x163   :  { %154 = dma.vmem_to_hbm [thread:$0]  %s149_s24, 512, %s282_s3, [#allocation4], %s237_s15, %s237_s15, %s238_s16  }
 0x164   :  { %234 = dma.done.wait [#allocation4], 512  }
 0x165   :  { %235 = vsyncadd [#allocation4], 4294966784 }
 0x166   :  { %158 = vsyncpa [#allocation3], 1 }
 0x167   :  { %159 = vsyncpa [#allocation6], 1 }
 0x168   :  { %160 = vsyncpa [#allocation4], 1 }

</bundles_post_ra>
